<compile_context>
chip_gen: v5e
topology: v5e:2x2
jax: 0.10.0
libtpu: 0.0.40
codegen_flags: <defaults>
</compile_context>

<pallas_src>
import functools

import jax
import jax.numpy as jnp
import numpy as np
from jax.experimental import pallas as pl
from jax.experimental.pallas import tpu as pltpu


def _ctc_neg_kernel(t_ref, s_ref, f_ref, out_ref, scores_ref, *,
                    inv_temp, tb, nt, td, nd, b_total, d_total, ncrops):
    i = pl.program_id(0)   # batch tile
    k = pl.program_id(1)   # feature (D) chunk

    @pl.when(k == 0)
    def _init():
        scores_ref[...] = jnp.zeros_like(scores_ref)

    # ---- partial scores for this D chunk: x[v, t, c] = sum_d t[v,t,d]*s[c,t,d]
    mask_d = (nd > 1) and (d_total % td != 0)          # static Python condition
    if mask_d:
        dcol = k * td + jax.lax.broadcasted_iota(jnp.int32, (1, td), 1)
        dvalid = dcol < d_total                        # (1, td)

    t0 = t_ref[0].astype(jnp.float32)                  # (tb, td), f32 accumulation
    t1 = t_ref[1].astype(jnp.float32)
    if mask_d:
        t0 = jnp.where(dvalid, t0, 0.0)
        t1 = jnp.where(dvalid, t1, 0.0)

    lane = jax.lax.broadcasted_iota(jnp.int32, (1, ncrops), 1)
    x0 = jnp.zeros((tb, ncrops), jnp.float32)
    x1 = jnp.zeros((tb, ncrops), jnp.float32)
    for c in range(ncrops):                            # crop loop: read s[c] once and
        sc = s_ref[c].astype(jnp.float32)              # use it for both teacher views
        if mask_d:
            sc = jnp.where(dvalid, sc, 0.0)
        x0c = jnp.sum(t0 * sc, axis=-1, keepdims=True)   # (tb, 1): VPU mul + lane reduce
        x1c = jnp.sum(t1 * sc, axis=-1, keepdims=True)
        x0 = x0 + jnp.where(lane == c, x0c, 0.0)         # place into crop column c
        x1 = x1 + jnp.where(lane == c, x1c, 0.0)
    scores_ref[0] += x0
    scores_ref[1] += x1

    # ---- finalize on the last D chunk
    @pl.when(k == nd - 1)
    def _finalize():
        row = i * tb + jax.lax.broadcasted_iota(jnp.int32, (tb, 1), 0)
        valid = row < b_total                          # (tb, 1) bool

        if nt == 1:
            f = f_ref[...]
        else:
            f = f_ref[pl.ds(pl.multiple_of(i * tb, 8), tb), :]
        neg_mask = (f == 0).astype(jnp.float32)        # (tb, ncrops)
        pos_mask = 1.0 - neg_mask
        n_pos = jnp.sum(pos_mask, axis=-1, keepdims=True)              # (tb, 1)

        x = scores_ref[...] * inv_temp                 # (2, tb, ncrops)
        # where (not multiply) so garbage rows of an overhanging last tile can
        # never turn into NaN through the mask.
        x = jnp.where(valid[None], x, 0.0)
        # TODO(synk): no max-subtraction before exp, to match the PyTorch
        # reference numerics exactly; add a per-row max shift if real logits
        # can overflow f32.
        logit = jnp.exp(x)
        neg_sum = jnp.sum(logit * neg_mask[None], axis=-1, keepdims=True)  # (2, tb, 1)
        # -log(p / (p + neg_sum + 1e-4)) == log(p + neg_sum + 1e-4) - x
        per_term = jnp.log(logit + neg_sum + 1e-4) - x
        pos_loss = jnp.sum(per_term * pos_mask[None], axis=-1, keepdims=True)
        extra = jnp.log(1.0 + neg_sum + 1e-4)          # the for...else term
        loss_b = jnp.sum(pos_loss + extra, axis=0)     # (tb, 1), both teacher views

        # TODO(synk): approx=True is a free EUP win on v5e but its relative
        # error is too coarse for the 1e-4 correctness check here.
        loss_b = loss_b * (0.5 * pl.reciprocal(n_pos + 1e-4, approx=False))
        loss_b = jnp.where(valid, loss_b, 0.0)

        partial = jnp.sum(loss_b, axis=0, keepdims=True)               # (1, 1)
        out_ref[...] = jnp.zeros((8, 128), jnp.float32) + partial      # lane-dense store


def _vmem_config():
    """Generation-aware (physical VMEM, block budget, declared limit)."""
    try:
        phys = int(getattr(pltpu.get_tpu_info(), "vmem_capacity_bytes", 64 << 20))
    except Exception:                  # query unavailable (e.g. off-TPU tracing)
        phys = 64 << 20
    if phys >= (100 << 20):            # v5e / v6e: 128 MiB physical VMEM
        return phys, 44 << 20, 64 << 20
    return phys, 30 << 20, 48 << 20    # v7x: 64 MiB per TensorCore (or unknown)


def _choose_tiles(b, d, ncrops, itemsize, budget, phys_vmem):
    """Pick (tb, nt, td, nd): batch-tile rows and D-chunk width."""
    sub = max(8, 32 // itemsize)       # sublane quantum for this dtype

    def per_row(td_):
        io = 2 * (2 + ncrops) * td_ * itemsize   # double-buffered teacher+student blocks
        f32 = 3 * td_ * 4                        # f32 teacher views + one crop product
        return io + f32 + 6144                   # scores scratch / masks / temporaries

    td, nd = d, 1
    rows = budget // per_row(d)
    if rows < min(b, sub):
        # D too large for even a minimal batch tile -> chunk the feature dim,
        # bounding the double-buffered working set for any D (review item 3).
        td = 128
        while 2 * td < d and per_row(2 * td) * min(b, sub) <= budget:
            td *= 2
        nd = int(pl.cdiv(d, td))
        rows = budget // per_row(td)

    tb = int(min(rows, b, 1024))
    if tb >= b:
        tb = b
    else:
        tb = max(sub, (tb // sub) * sub)

    # v7x has two TensorCores per chip: make sure the "parallel" batch axis has
    # at least two steps so both cores pull HBM.
    # TODO(synk): switch to pltpu.CORE_PARALLEL if plain "parallel" doesn't shard.
    if phys_vmem < (100 << 20) and tb >= b and b >= 2 * sub:
        tb = int(sub * pl.cdiv(pl.cdiv(b, 2), sub))

    nt = int(pl.cdiv(b, tb))
    return tb, nt, td, nd


def ctc_loss_neg(student_output, teacher_output, flags, *, ncrops=10, temp=1.0,
                 compute_dtype=None):
    """JAX/Pallas equivalent of CTCLoss_neg.forward."""
    b = int(flags.shape[0])
    d = int(student_output.shape[-1])

    if compute_dtype is not None:
        # HBM-bandwidth-bound kernel (~1.7 FLOP/byte): bf16 inputs are ~2x faster.
        # TODO(synk): fp8 for the dominant student stream on v7x if precision allows.
        student_output = student_output.astype(compute_dtype)
        teacher_output = teacher_output.astype(compute_dtype)

    student = student_output.reshape(ncrops, b, d)   # (ncrops, b, D) - no HBM copy
    teacher = teacher_output.reshape(2, b, d)        # (2, b, D)
    itemsize = jnp.dtype(student.dtype).itemsize

    phys, budget, vmem_limit = _vmem_config()
    tb, nt, td, nd = _choose_tiles(b, d, ncrops, itemsize, budget, phys)

    # flags are tiny; pad rows so the in-kernel sublane slice never goes OOB.
    b_pad = nt * tb
    flags_i32 = flags.astype(jnp.int32).reshape(b, ncrops)
    if b_pad != b:
        flags_i32 = jnp.pad(flags_i32, ((0, b_pad - b), (0, 0)))

    kernel = functools.partial(
        _ctc_neg_kernel, inv_temp=1.0 / float(temp), tb=tb, nt=nt, td=td, nd=nd,
        b_total=b, d_total=d, ncrops=ncrops)

    out = pl.pallas_call(
        kernel,
        out_shape=jax.ShapeDtypeStruct((nt * 8, 128), jnp.float32),
        grid=(nt, nd),
        in_specs=[
            pl.BlockSpec((2, tb, td), lambda i, k: (0, i, k)),
            pl.BlockSpec((ncrops, tb, td), lambda i, k: (0, i, k)),
            pl.BlockSpec((b_pad, ncrops), lambda i, k: (0, 0)),   # resident, loaded once
        ],
        out_specs=pl.BlockSpec((8, 128), lambda i, k: (i, 0)),
        scratch_shapes=[pltpu.VMEM((2, tb, ncrops), jnp.float32)],
        compiler_params=pltpu.CompilerParams(
            dimension_semantics=("parallel", "arbitrary"),
            vmem_limit_bytes=int(vmem_limit),
        ),
    )(teacher, student, flags_i32)

    partials = out.reshape(nt, 8, 128)[:, 0, 0]      # one partial per batch tile
    return jnp.sum(partials) / b


def _reference_loss(student_output, teacher_output, flags, ncrops, temp):
    """Faithful NumPy transcription of the PyTorch forward (loops included)."""
    b = flags.shape[0]
    d = student_output.shape[-1]
    s = np.asarray(student_output, np.float64).reshape(ncrops, b, d).transpose(1, 0, 2)
    t = np.asarray(teacher_output, np.float64).reshape(2, b, d).transpose(1, 0, 2)
    f = np.asarray(flags)
    logits = np.exp(np.einsum("bnd,bcd->bnc", t, s) / temp)  # (b, 2, ncrops)
    total = 0.0
    for i in range(b):
        neg = logits[i][:, f[i] == 0]          # (2, n_neg)
        pos_inds = np.nonzero(f[i])[0]
        neg_sum = neg.sum(axis=1)              # (2,)
        loss = np.zeros(2)
        for j in pos_inds:
            p = logits[i, :, j]
            loss = loss + (-np.log(p / (p + neg_sum + 1e-4)))
        # for...else -> always executed once
        loss = loss + (-np.log(1.0 / (1.0 + neg_sum + 1e-4)))
        total += loss.sum() / 2.0 / (pos_inds.shape[0] + 1e-4)
    return total / b


if __name__ == "__main__":
    NCROPS, TEMP = 10, 1.0
    b, d = 2, 32

    key = jax.random.PRNGKey(0)
    k1, k2, k3 = jax.random.split(key, 3)
    student = 0.1 * jax.random.normal(k1, (NCROPS * b, d), dtype=jnp.float32)
    teacher = 0.1 * jax.random.normal(k2, (2 * b, d), dtype=jnp.float32)
    flags = (jax.random.uniform(k3, (b, NCROPS)) > 0.5).astype(jnp.int32)

    out = ctc_loss_neg(student, teacher, flags, ncrops=NCROPS, temp=TEMP)
    out = jax.block_until_ready(out)

    ref = _reference_loss(np.asarray(student), np.asarray(teacher),
                          np.asarray(flags), NCROPS, TEMP)
    np.testing.assert_allclose(float(out), float(ref), rtol=1e-4, atol=1e-5)
    print("KERNEL_OK")
</pallas_src>

<mosaic_0001>
module attributes {stable_mosaic.version = 11 : i64} {
  func.func @_ctc_neg_kernel(%arg0: i32, %arg1: i32, %arg2: memref<2x2x32xf32, #tpu.memory_space<vmem>>, %arg3: memref<10x2x32xf32, #tpu.memory_space<vmem>>, %arg4: memref<2x10xi32, #tpu.memory_space<vmem>>, %arg5: memref<8x128xf32, #tpu.memory_space<vmem>>, %arg6: memref<2x2x10xf32, #tpu.memory_space<vmem>>) attributes {dimension_semantics = [#tpu.dimension_semantics<parallel>, #tpu.dimension_semantics<arbitrary>], iteration_bounds = array<i64: 1, 1>, scalar_prefetch = 0 : i64, scratch_operands = 1 : i64, tpu.core_type = #tpu.core_type<tc>, window_params = [{transform_indices = @transform_0, window_bounds = array<i64: 2, 2, 32>}, {transform_indices = @transform_1, window_bounds = array<i64: 10, 2, 32>}, {pipeline_mode = #tpu.pipeline_mode<synchronous>, transform_indices = @transform_2, window_bounds = array<i64: 2, 10>}, {transform_indices = @transform_3, window_bounds = array<i64: 8, 128>}]} {
    %c0_i32 = arith.constant 0 : i32
    %0 = arith.cmpi eq, %arg1, %c0_i32 : i32
    %1 = arith.extui %0 : i1 to i32
    %c0_i32_0 = arith.constant 0 : i32
    %2 = arith.cmpi ne, %1, %c0_i32_0 : i32
    scf.if %2 {
      %cst_93 = arith.constant 0.000000e+00 : f32
      %285 = vector.broadcast %cst_93 : f32 to vector<2x2x10xf32>
      %c0_94 = arith.constant 0 : index
      %c0_95 = arith.constant 0 : index
      %c0_96 = arith.constant 0 : index
      %286 = vector.load %arg6[%c0_94, %c0_95, %c0_96] : memref<2x2x10xf32, #tpu.memory_space<vmem>>, vector<2x2x10xf32>
      tpu.vector_store %arg6[%c0_94, %c0_95, %c0_96], %285 {strides = array<i32>} : memref<2x2x10xf32, #tpu.memory_space<vmem>>, vector<2x2x10xf32>,
    } else {
    }
    %c0 = arith.constant 0 : index
    %c0_1 = arith.constant 0 : index
    %c0_2 = arith.constant 0 : index
    %3 = vector.load %arg2[%c0, %c0_1, %c0_2] : memref<2x2x32xf32, #tpu.memory_space<vmem>>, vector<1x2x32xf32>
    %4 = vector.shape_cast %3 : vector<1x2x32xf32> to vector<2x32xf32>
    %c1 = arith.constant 1 : index
    %c0_3 = arith.constant 0 : index
    %c0_4 = arith.constant 0 : index
    %5 = vector.load %arg2[%c1, %c0_3, %c0_4] : memref<2x2x32xf32, #tpu.memory_space<vmem>>, vector<1x2x32xf32>
    %6 = vector.shape_cast %5 : vector<1x2x32xf32> to vector<2x32xf32>
    %7 = tpu.iota {dimensions = array<i32: 1>} : vector<1x10xi32>
    %cst = arith.constant 0.000000e+00 : f32
    %8 = vector.broadcast %cst : f32 to vector<2x10xf32>
    %cst_5 = arith.constant 0.000000e+00 : f32
    %9 = vector.broadcast %cst_5 : f32 to vector<2x10xf32>
    %c0_6 = arith.constant 0 : index
    %c0_7 = arith.constant 0 : index
    %c0_8 = arith.constant 0 : index
    %10 = vector.load %arg3[%c0_6, %c0_7, %c0_8] : memref<10x2x32xf32, #tpu.memory_space<vmem>>, vector<1x2x32xf32>
    %11 = vector.shape_cast %10 : vector<1x2x32xf32> to vector<2x32xf32>
    %12 = arith.mulf %4, %11 : vector<2x32xf32>
    %cst_9 = arith.constant dense<0.000000e+00> : vector<2xf32>
    %13 = vector.multi_reduction <add>, %12, %cst_9 [1] : vector<2x32xf32> to vector<2xf32>
    %14 = vector.shape_cast %13 : vector<2xf32> to vector<2x1xf32>
    %15 = arith.mulf %6, %11 : vector<2x32xf32>
    %cst_10 = arith.constant dense<0.000000e+00> : vector<2xf32>
    %16 = vector.multi_reduction <add>, %15, %cst_10 [1] : vector<2x32xf32> to vector<2xf32>
    %17 = vector.shape_cast %16 : vector<2xf32> to vector<2x1xf32>
    %c0_i32_11 = arith.constant 0 : i32
    %18 = vector.broadcast %c0_i32_11 : i32 to vector<1x10xi32>
    %19 = arith.cmpi eq, %7, %18 : vector<1x10xi32>
    %cst_12 = arith.constant 0.000000e+00 : f32
    %20 = vector.shape_cast %19 : vector<1x10xi1> to vector<1x10xi1>
    %21 = vector.broadcast %20 : vector<1x10xi1> to vector<2x10xi1>
    %22 = vector.shape_cast %14 : vector<2x1xf32> to vector<2x1xf32>
    %23 = vector.broadcast %22 : vector<2x1xf32> to vector<2x10xf32>
    %24 = vector.broadcast %cst_12 : f32 to vector<2x10xf32>
    %25 = arith.select %21, %23, %24 : vector<2x10xi1>, vector<2x10xf32>
    %26 = arith.addf %8, %25 : vector<2x10xf32>
    %c0_i32_13 = arith.constant 0 : i32
    %27 = vector.broadcast %c0_i32_13 : i32 to vector<1x10xi32>
    %28 = arith.cmpi eq, %7, %27 : vector<1x10xi32>
    %cst_14 = arith.constant 0.000000e+00 : f32
    %29 = vector.shape_cast %28 : vector<1x10xi1> to vector<1x10xi1>
    %30 = vector.broadcast %29 : vector<1x10xi1> to vector<2x10xi1>
    %31 = vector.shape_cast %17 : vector<2x1xf32> to vector<2x1xf32>
    %32 = vector.broadcast %31 : vector<2x1xf32> to vector<2x10xf32>
    %33 = vector.broadcast %cst_14 : f32 to vector<2x10xf32>
    %34 = arith.select %30, %32, %33 : vector<2x10xi1>, vector<2x10xf32>
    %35 = arith.addf %9, %34 : vector<2x10xf32>
    %c1_15 = arith.constant 1 : index
    %c0_16 = arith.constant 0 : index
    %c0_17 = arith.constant 0 : index
    %36 = vector.load %arg3[%c1_15, %c0_16, %c0_17] : memref<10x2x32xf32, #tpu.memory_space<vmem>>, vector<1x2x32xf32>
    %37 = vector.shape_cast %36 : vector<1x2x32xf32> to vector<2x32xf32>
    %38 = arith.mulf %4, %37 : vector<2x32xf32>
    %cst_18 = arith.constant dense<0.000000e+00> : vector<2xf32>
    %39 = vector.multi_reduction <add>, %38, %cst_18 [1] : vector<2x32xf32> to vector<2xf32>
    %40 = vector.shape_cast %39 : vector<2xf32> to vector<2x1xf32>
    %41 = arith.mulf %6, %37 : vector<2x32xf32>
    %cst_19 = arith.constant dense<0.000000e+00> : vector<2xf32>
    %42 = vector.multi_reduction <add>, %41, %cst_19 [1] : vector<2x32xf32> to vector<2xf32>
    %43 = vector.shape_cast %42 : vector<2xf32> to vector<2x1xf32>
    %c1_i32 = arith.constant 1 : i32
    %44 = vector.broadcast %c1_i32 : i32 to vector<1x10xi32>
    %45 = arith.cmpi eq, %7, %44 : vector<1x10xi32>
    %cst_20 = arith.constant 0.000000e+00 : f32
    %46 = vector.shape_cast %45 : vector<1x10xi1> to vector<1x10xi1>
    %47 = vector.broadcast %46 : vector<1x10xi1> to vector<2x10xi1>
    %48 = vector.shape_cast %40 : vector<2x1xf32> to vector<2x1xf32>
    %49 = vector.broadcast %48 : vector<2x1xf32> to vector<2x10xf32>
    %50 = vector.broadcast %cst_20 : f32 to vector<2x10xf32>
    %51 = arith.select %47, %49, %50 : vector<2x10xi1>, vector<2x10xf32>
    %52 = arith.addf %26, %51 : vector<2x10xf32>
    %c1_i32_21 = arith.constant 1 : i32
    %53 = vector.broadcast %c1_i32_21 : i32 to vector<1x10xi32>
    %54 = arith.cmpi eq, %7, %53 : vector<1x10xi32>
    %cst_22 = arith.constant 0.000000e+00 : f32
    %55 = vector.shape_cast %54 : vector<1x10xi1> to vector<1x10xi1>
    %56 = vector.broadcast %55 : vector<1x10xi1> to vector<2x10xi1>
    %57 = vector.shape_cast %43 : vector<2x1xf32> to vector<2x1xf32>
    %58 = vector.broadcast %57 : vector<2x1xf32> to vector<2x10xf32>
    %59 = vector.broadcast %cst_22 : f32 to vector<2x10xf32>
    %60 = arith.select %56, %58, %59 : vector<2x10xi1>, vector<2x10xf32>
    %61 = arith.addf %35, %60 : vector<2x10xf32>
    %c2 = arith.constant 2 : index
    %c0_23 = arith.constant 0 : index
    %c0_24 = arith.constant 0 : index
    %62 = vector.load %arg3[%c2, %c0_23, %c0_24] : memref<10x2x32xf32, #tpu.memory_space<vmem>>, vector<1x2x32xf32>
    %63 = vector.shape_cast %62 : vector<1x2x32xf32> to vector<2x32xf32>
    %64 = arith.mulf %4, %63 : vector<2x32xf32>
    %cst_25 = arith.constant dense<0.000000e+00> : vector<2xf32>
    %65 = vector.multi_reduction <add>, %64, %cst_25 [1] : vector<2x32xf32> to vector<2xf32>
    %66 = vector.shape_cast %65 : vector<2xf32> to vector<2x1xf32>
    %67 = arith.mulf %6, %63 : vector<2x32xf32>
    %cst_26 = arith.constant dense<0.000000e+00> : vector<2xf32>
    %68 = vector.multi_reduction <add>, %67, %cst_26 [1] : vector<2x32xf32> to vector<2xf32>
    %69 = vector.shape_cast %68 : vector<2xf32> to vector<2x1xf32>
    %c2_i32 = arith.constant 2 : i32
    %70 = vector.broadcast %c2_i32 : i32 to vector<1x10xi32>
    %71 = arith.cmpi eq, %7, %70 : vector<1x10xi32>
    %cst_27 = arith.constant 0.000000e+00 : f32
    %72 = vector.shape_cast %71 : vector<1x10xi1> to vector<1x10xi1>
    %73 = vector.broadcast %72 : vector<1x10xi1> to vector<2x10xi1>
    %74 = vector.shape_cast %66 : vector<2x1xf32> to vector<2x1xf32>
    %75 = vector.broadcast %74 : vector<2x1xf32> to vector<2x10xf32>
    %76 = vector.broadcast %cst_27 : f32 to vector<2x10xf32>
    %77 = arith.select %73, %75, %76 : vector<2x10xi1>, vector<2x10xf32>
    %78 = arith.addf %52, %77 : vector<2x10xf32>
    %c2_i32_28 = arith.constant 2 : i32
    %79 = vector.broadcast %c2_i32_28 : i32 to vector<1x10xi32>
    %80 = arith.cmpi eq, %7, %79 : vector<1x10xi32>
    %cst_29 = arith.constant 0.000000e+00 : f32
    %81 = vector.shape_cast %80 : vector<1x10xi1> to vector<1x10xi1>
    %82 = vector.broadcast %81 : vector<1x10xi1> to vector<2x10xi1>
    %83 = vector.shape_cast %69 : vector<2x1xf32> to vector<2x1xf32>
    %84 = vector.broadcast %83 : vector<2x1xf32> to vector<2x10xf32>
    %85 = vector.broadcast %cst_29 : f32 to vector<2x10xf32>
    %86 = arith.select %82, %84, %85 : vector<2x10xi1>, vector<2x10xf32>
    %87 = arith.addf %61, %86 : vector<2x10xf32>
    %c3 = arith.constant 3 : index
    %c0_30 = arith.constant 0 : index
    %c0_31 = arith.constant 0 : index
    %88 = vector.load %arg3[%c3, %c0_30, %c0_31] : memref<10x2x32xf32, #tpu.memory_space<vmem>>, vector<1x2x32xf32>
    %89 = vector.shape_cast %88 : vector<1x2x32xf32> to vector<2x32xf32>
    %90 = arith.mulf %4, %89 : vector<2x32xf32>
    %cst_32 = arith.constant dense<0.000000e+00> : vector<2xf32>
    %91 = vector.multi_reduction <add>, %90, %cst_32 [1] : vector<2x32xf32> to vector<2xf32>
    %92 = vector.shape_cast %91 : vector<2xf32> to vector<2x1xf32>
    %93 = arith.mulf %6, %89 : vector<2x32xf32>
    %cst_33 = arith.constant dense<0.000000e+00> : vector<2xf32>
    %94 = vector.multi_reduction <add>, %93, %cst_33 [1] : vector<2x32xf32> to vector<2xf32>
    %95 = vector.shape_cast %94 : vector<2xf32> to vector<2x1xf32>
    %c3_i32 = arith.constant 3 : i32
    %96 = vector.broadcast %c3_i32 : i32 to vector<1x10xi32>
    %97 = arith.cmpi eq, %7, %96 : vector<1x10xi32>
    %cst_34 = arith.constant 0.000000e+00 : f32
    %98 = vector.shape_cast %97 : vector<1x10xi1> to vector<1x10xi1>
    %99 = vector.broadcast %98 : vector<1x10xi1> to vector<2x10xi1>
    %100 = vector.shape_cast %92 : vector<2x1xf32> to vector<2x1xf32>
    %101 = vector.broadcast %100 : vector<2x1xf32> to vector<2x10xf32>
    %102 = vector.broadcast %cst_34 : f32 to vector<2x10xf32>
    %103 = arith.select %99, %101, %102 : vector<2x10xi1>, vector<2x10xf32>
    %104 = arith.addf %78, %103 : vector<2x10xf32>
    %c3_i32_35 = arith.constant 3 : i32
    %105 = vector.broadcast %c3_i32_35 : i32 to vector<1x10xi32>
    %106 = arith.cmpi eq, %7, %105 : vector<1x10xi32>
    %cst_36 = arith.constant 0.000000e+00 : f32
    %107 = vector.shape_cast %106 : vector<1x10xi1> to vector<1x10xi1>
    %108 = vector.broadcast %107 : vector<1x10xi1> to vector<2x10xi1>
    %109 = vector.shape_cast %95 : vector<2x1xf32> to vector<2x1xf32>
    %110 = vector.broadcast %109 : vector<2x1xf32> to vector<2x10xf32>
    %111 = vector.broadcast %cst_36 : f32 to vector<2x10xf32>
    %112 = arith.select %108, %110, %111 : vector<2x10xi1>, vector<2x10xf32>
    %113 = arith.addf %87, %112 : vector<2x10xf32>
    %c4 = arith.constant 4 : index
    %c0_37 = arith.constant 0 : index
    %c0_38 = arith.constant 0 : index
    %114 = vector.load %arg3[%c4, %c0_37, %c0_38] : memref<10x2x32xf32, #tpu.memory_space<vmem>>, vector<1x2x32xf32>
    %115 = vector.shape_cast %114 : vector<1x2x32xf32> to vector<2x32xf32>
    %116 = arith.mulf %4, %115 : vector<2x32xf32>
    %cst_39 = arith.constant dense<0.000000e+00> : vector<2xf32>
    %117 = vector.multi_reduction <add>, %116, %cst_39 [1] : vector<2x32xf32> to vector<2xf32>
    %118 = vector.shape_cast %117 : vector<2xf32> to vector<2x1xf32>
    %119 = arith.mulf %6, %115 : vector<2x32xf32>
    %cst_40 = arith.constant dense<0.000000e+00> : vector<2xf32>
    %120 = vector.multi_reduction <add>, %119, %cst_40 [1] : vector<2x32xf32> to vector<2xf32>
    %121 = vector.shape_cast %120 : vector<2xf32> to vector<2x1xf32>
    %c4_i32 = arith.constant 4 : i32
    %122 = vector.broadcast %c4_i32 : i32 to vector<1x10xi32>
    %123 = arith.cmpi eq, %7, %122 : vector<1x10xi32>
    %cst_41 = arith.constant 0.000000e+00 : f32
    %124 = vector.shape_cast %123 : vector<1x10xi1> to vector<1x10xi1>
    %125 = vector.broadcast %124 : vector<1x10xi1> to vector<2x10xi1>
    %126 = vector.shape_cast %118 : vector<2x1xf32> to vector<2x1xf32>
    %127 = vector.broadcast %126 : vector<2x1xf32> to vector<2x10xf32>
    %128 = vector.broadcast %cst_41 : f32 to vector<2x10xf32>
    %129 = arith.select %125, %127, %128 : vector<2x10xi1>, vector<2x10xf32>
    %130 = arith.addf %104, %129 : vector<2x10xf32>
    %c4_i32_42 = arith.constant 4 : i32
    %131 = vector.broadcast %c4_i32_42 : i32 to vector<1x10xi32>
    %132 = arith.cmpi eq, %7, %131 : vector<1x10xi32>
    %cst_43 = arith.constant 0.000000e+00 : f32
    %133 = vector.shape_cast %132 : vector<1x10xi1> to vector<1x10xi1>
    %134 = vector.broadcast %133 : vector<1x10xi1> to vector<2x10xi1>
    %135 = vector.shape_cast %121 : vector<2x1xf32> to vector<2x1xf32>
    %136 = vector.broadcast %135 : vector<2x1xf32> to vector<2x10xf32>
    %137 = vector.broadcast %cst_43 : f32 to vector<2x10xf32>
    %138 = arith.select %134, %136, %137 : vector<2x10xi1>, vector<2x10xf32>
    %139 = arith.addf %113, %138 : vector<2x10xf32>
    %c5 = arith.constant 5 : index
    %c0_44 = arith.constant 0 : index
    %c0_45 = arith.constant 0 : index
    %140 = vector.load %arg3[%c5, %c0_44, %c0_45] : memref<10x2x32xf32, #tpu.memory_space<vmem>>, vector<1x2x32xf32>
    %141 = vector.shape_cast %140 : vector<1x2x32xf32> to vector<2x32xf32>
    %142 = arith.mulf %4, %141 : vector<2x32xf32>
    %cst_46 = arith.constant dense<0.000000e+00> : vector<2xf32>
    %143 = vector.multi_reduction <add>, %142, %cst_46 [1] : vector<2x32xf32> to vector<2xf32>
    %144 = vector.shape_cast %143 : vector<2xf32> to vector<2x1xf32>
    %145 = arith.mulf %6, %141 : vector<2x32xf32>
    %cst_47 = arith.constant dense<0.000000e+00> : vector<2xf32>
    %146 = vector.multi_reduction <add>, %145, %cst_47 [1] : vector<2x32xf32> to vector<2xf32>
    %147 = vector.shape_cast %146 : vector<2xf32> to vector<2x1xf32>
    %c5_i32 = arith.constant 5 : i32
    %148 = vector.broadcast %c5_i32 : i32 to vector<1x10xi32>
    %149 = arith.cmpi eq, %7, %148 : vector<1x10xi32>
    %cst_48 = arith.constant 0.000000e+00 : f32
    %150 = vector.shape_cast %149 : vector<1x10xi1> to vector<1x10xi1>
    %151 = vector.broadcast %150 : vector<1x10xi1> to vector<2x10xi1>
    %152 = vector.shape_cast %144 : vector<2x1xf32> to vector<2x1xf32>
    %153 = vector.broadcast %152 : vector<2x1xf32> to vector<2x10xf32>
    %154 = vector.broadcast %cst_48 : f32 to vector<2x10xf32>
    %155 = arith.select %151, %153, %154 : vector<2x10xi1>, vector<2x10xf32>
    %156 = arith.addf %130, %155 : vector<2x10xf32>
    %c5_i32_49 = arith.constant 5 : i32
    %157 = vector.broadcast %c5_i32_49 : i32 to vector<1x10xi32>
    %158 = arith.cmpi eq, %7, %157 : vector<1x10xi32>
    %cst_50 = arith.constant 0.000000e+00 : f32
    %159 = vector.shape_cast %158 : vector<1x10xi1> to vector<1x10xi1>
    %160 = vector.broadcast %159 : vector<1x10xi1> to vector<2x10xi1>
    %161 = vector.shape_cast %147 : vector<2x1xf32> to vector<2x1xf32>
    %162 = vector.broadcast %161 : vector<2x1xf32> to vector<2x10xf32>
    %163 = vector.broadcast %cst_50 : f32 to vector<2x10xf32>
    %164 = arith.select %160, %162, %163 : vector<2x10xi1>, vector<2x10xf32>
    %165 = arith.addf %139, %164 : vector<2x10xf32>
    %c6 = arith.constant 6 : index
    %c0_51 = arith.constant 0 : index
    %c0_52 = arith.constant 0 : index
    %166 = vector.load %arg3[%c6, %c0_51, %c0_52] : memref<10x2x32xf32, #tpu.memory_space<vmem>>, vector<1x2x32xf32>
    %167 = vector.shape_cast %166 : vector<1x2x32xf32> to vector<2x32xf32>
    %168 = arith.mulf %4, %167 : vector<2x32xf32>
    %cst_53 = arith.constant dense<0.000000e+00> : vector<2xf32>
    %169 = vector.multi_reduction <add>, %168, %cst_53 [1] : vector<2x32xf32> to vector<2xf32>
    %170 = vector.shape_cast %169 : vector<2xf32> to vector<2x1xf32>
    %171 = arith.mulf %6, %167 : vector<2x32xf32>
    %cst_54 = arith.constant dense<0.000000e+00> : vector<2xf32>
    %172 = vector.multi_reduction <add>, %171, %cst_54 [1] : vector<2x32xf32> to vector<2xf32>
    %173 = vector.shape_cast %172 : vector<2xf32> to vector<2x1xf32>
    %c6_i32 = arith.constant 6 : i32
    %174 = vector.broadcast %c6_i32 : i32 to vector<1x10xi32>
    %175 = arith.cmpi eq, %7, %174 : vector<1x10xi32>
    %cst_55 = arith.constant 0.000000e+00 : f32
    %176 = vector.shape_cast %175 : vector<1x10xi1> to vector<1x10xi1>
    %177 = vector.broadcast %176 : vector<1x10xi1> to vector<2x10xi1>
    %178 = vector.shape_cast %170 : vector<2x1xf32> to vector<2x1xf32>
    %179 = vector.broadcast %178 : vector<2x1xf32> to vector<2x10xf32>
    %180 = vector.broadcast %cst_55 : f32 to vector<2x10xf32>
    %181 = arith.select %177, %179, %180 : vector<2x10xi1>, vector<2x10xf32>
    %182 = arith.addf %156, %181 : vector<2x10xf32>
    %c6_i32_56 = arith.constant 6 : i32
    %183 = vector.broadcast %c6_i32_56 : i32 to vector<1x10xi32>
    %184 = arith.cmpi eq, %7, %183 : vector<1x10xi32>
    %cst_57 = arith.constant 0.000000e+00 : f32
    %185 = vector.shape_cast %184 : vector<1x10xi1> to vector<1x10xi1>
    %186 = vector.broadcast %185 : vector<1x10xi1> to vector<2x10xi1>
    %187 = vector.shape_cast %173 : vector<2x1xf32> to vector<2x1xf32>
    %188 = vector.broadcast %187 : vector<2x1xf32> to vector<2x10xf32>
    %189 = vector.broadcast %cst_57 : f32 to vector<2x10xf32>
    %190 = arith.select %186, %188, %189 : vector<2x10xi1>, vector<2x10xf32>
    %191 = arith.addf %165, %190 : vector<2x10xf32>
    %c7 = arith.constant 7 : index
    %c0_58 = arith.constant 0 : index
    %c0_59 = arith.constant 0 : index
    %192 = vector.load %arg3[%c7, %c0_58, %c0_59] : memref<10x2x32xf32, #tpu.memory_space<vmem>>, vector<1x2x32xf32>
    %193 = vector.shape_cast %192 : vector<1x2x32xf32> to vector<2x32xf32>
    %194 = arith.mulf %4, %193 : vector<2x32xf32>
    %cst_60 = arith.constant dense<0.000000e+00> : vector<2xf32>
    %195 = vector.multi_reduction <add>, %194, %cst_60 [1] : vector<2x32xf32> to vector<2xf32>
    %196 = vector.shape_cast %195 : vector<2xf32> to vector<2x1xf32>
    %197 = arith.mulf %6, %193 : vector<2x32xf32>
    %cst_61 = arith.constant dense<0.000000e+00> : vector<2xf32>
    %198 = vector.multi_reduction <add>, %197, %cst_61 [1] : vector<2x32xf32> to vector<2xf32>
    %199 = vector.shape_cast %198 : vector<2xf32> to vector<2x1xf32>
    %c7_i32 = arith.constant 7 : i32
    %200 = vector.broadcast %c7_i32 : i32 to vector<1x10xi32>
    %201 = arith.cmpi eq, %7, %200 : vector<1x10xi32>
    %cst_62 = arith.constant 0.000000e+00 : f32
    %202 = vector.shape_cast %201 : vector<1x10xi1> to vector<1x10xi1>
    %203 = vector.broadcast %202 : vector<1x10xi1> to vector<2x10xi1>
    %204 = vector.shape_cast %196 : vector<2x1xf32> to vector<2x1xf32>
    %205 = vector.broadcast %204 : vector<2x1xf32> to vector<2x10xf32>
    %206 = vector.broadcast %cst_62 : f32 to vector<2x10xf32>
    %207 = arith.select %203, %205, %206 : vector<2x10xi1>, vector<2x10xf32>
    %208 = arith.addf %182, %207 : vector<2x10xf32>
    %c7_i32_63 = arith.constant 7 : i32
    %209 = vector.broadcast %c7_i32_63 : i32 to vector<1x10xi32>
    %210 = arith.cmpi eq, %7, %209 : vector<1x10xi32>
    %cst_64 = arith.constant 0.000000e+00 : f32
    %211 = vector.shape_cast %210 : vector<1x10xi1> to vector<1x10xi1>
    %212 = vector.broadcast %211 : vector<1x10xi1> to vector<2x10xi1>
    %213 = vector.shape_cast %199 : vector<2x1xf32> to vector<2x1xf32>
    %214 = vector.broadcast %213 : vector<2x1xf32> to vector<2x10xf32>
    %215 = vector.broadcast %cst_64 : f32 to vector<2x10xf32>
    %216 = arith.select %212, %214, %215 : vector<2x10xi1>, vector<2x10xf32>
    %217 = arith.addf %191, %216 : vector<2x10xf32>
    %c8 = arith.constant 8 : index
    %c0_65 = arith.constant 0 : index
    %c0_66 = arith.constant 0 : index
    %218 = vector.load %arg3[%c8, %c0_65, %c0_66] : memref<10x2x32xf32, #tpu.memory_space<vmem>>, vector<1x2x32xf32>
    %219 = vector.shape_cast %218 : vector<1x2x32xf32> to vector<2x32xf32>
    %220 = arith.mulf %4, %219 : vector<2x32xf32>
    %cst_67 = arith.constant dense<0.000000e+00> : vector<2xf32>
    %221 = vector.multi_reduction <add>, %220, %cst_67 [1] : vector<2x32xf32> to vector<2xf32>
    %222 = vector.shape_cast %221 : vector<2xf32> to vector<2x1xf32>
    %223 = arith.mulf %6, %219 : vector<2x32xf32>
    %cst_68 = arith.constant dense<0.000000e+00> : vector<2xf32>
    %224 = vector.multi_reduction <add>, %223, %cst_68 [1] : vector<2x32xf32> to vector<2xf32>
    %225 = vector.shape_cast %224 : vector<2xf32> to vector<2x1xf32>
    %c8_i32 = arith.constant 8 : i32
    %226 = vector.broadcast %c8_i32 : i32 to vector<1x10xi32>
    %227 = arith.cmpi eq, %7, %226 : vector<1x10xi32>
    %cst_69 = arith.constant 0.000000e+00 : f32
    %228 = vector.shape_cast %227 : vector<1x10xi1> to vector<1x10xi1>
    %229 = vector.broadcast %228 : vector<1x10xi1> to vector<2x10xi1>
    %230 = vector.shape_cast %222 : vector<2x1xf32> to vector<2x1xf32>
    %231 = vector.broadcast %230 : vector<2x1xf32> to vector<2x10xf32>
    %232 = vector.broadcast %cst_69 : f32 to vector<2x10xf32>
    %233 = arith.select %229, %231, %232 : vector<2x10xi1>, vector<2x10xf32>
    %234 = arith.addf %208, %233 : vector<2x10xf32>
    %c8_i32_70 = arith.constant 8 : i32
    %235 = vector.broadcast %c8_i32_70 : i32 to vector<1x10xi32>
    %236 = arith.cmpi eq, %7, %235 : vector<1x10xi32>
    %cst_71 = arith.constant 0.000000e+00 : f32
    %237 = vector.shape_cast %236 : vector<1x10xi1> to vector<1x10xi1>
    %238 = vector.broadcast %237 : vector<1x10xi1> to vector<2x10xi1>
    %239 = vector.shape_cast %225 : vector<2x1xf32> to vector<2x1xf32>
    %240 = vector.broadcast %239 : vector<2x1xf32> to vector<2x10xf32>
    %241 = vector.broadcast %cst_71 : f32 to vector<2x10xf32>
    %242 = arith.select %238, %240, %241 : vector<2x10xi1>, vector<2x10xf32>
    %243 = arith.addf %217, %242 : vector<2x10xf32>
    %c9 = arith.constant 9 : index
    %c0_72 = arith.constant 0 : index
    %c0_73 = arith.constant 0 : index
    %244 = vector.load %arg3[%c9, %c0_72, %c0_73] : memref<10x2x32xf32, #tpu.memory_space<vmem>>, vector<1x2x32xf32>
    %245 = vector.shape_cast %244 : vector<1x2x32xf32> to vector<2x32xf32>
    %246 = arith.mulf %4, %245 : vector<2x32xf32>
    %cst_74 = arith.constant dense<0.000000e+00> : vector<2xf32>
    %247 = vector.multi_reduction <add>, %246, %cst_74 [1] : vector<2x32xf32> to vector<2xf32>
    %248 = vector.shape_cast %247 : vector<2xf32> to vector<2x1xf32>
    %249 = arith.mulf %6, %245 : vector<2x32xf32>
    %cst_75 = arith.constant dense<0.000000e+00> : vector<2xf32>
    %250 = vector.multi_reduction <add>, %249, %cst_75 [1] : vector<2x32xf32> to vector<2xf32>
    %251 = vector.shape_cast %250 : vector<2xf32> to vector<2x1xf32>
    %c9_i32 = arith.constant 9 : i32
    %252 = vector.broadcast %c9_i32 : i32 to vector<1x10xi32>
    %253 = arith.cmpi eq, %7, %252 : vector<1x10xi32>
    %cst_76 = arith.constant 0.000000e+00 : f32
    %254 = vector.shape_cast %253 : vector<1x10xi1> to vector<1x10xi1>
    %255 = vector.broadcast %254 : vector<1x10xi1> to vector<2x10xi1>
    %256 = vector.shape_cast %248 : vector<2x1xf32> to vector<2x1xf32>
    %257 = vector.broadcast %256 : vector<2x1xf32> to vector<2x10xf32>
    %258 = vector.broadcast %cst_76 : f32 to vector<2x10xf32>
    %259 = arith.select %255, %257, %258 : vector<2x10xi1>, vector<2x10xf32>
    %260 = arith.addf %234, %259 : vector<2x10xf32>
    %c9_i32_77 = arith.constant 9 : i32
    %261 = vector.broadcast %c9_i32_77 : i32 to vector<1x10xi32>
    %262 = arith.cmpi eq, %7, %261 : vector<1x10xi32>
    %cst_78 = arith.constant 0.000000e+00 : f32
    %263 = vector.shape_cast %262 : vector<1x10xi1> to vector<1x10xi1>
    %264 = vector.broadcast %263 : vector<1x10xi1> to vector<2x10xi1>
    %265 = vector.shape_cast %251 : vector<2x1xf32> to vector<2x1xf32>
    %266 = vector.broadcast %265 : vector<2x1xf32> to vector<2x10xf32>
    %267 = vector.broadcast %cst_78 : f32 to vector<2x10xf32>
    %268 = arith.select %264, %266, %267 : vector<2x10xi1>, vector<2x10xf32>
    %269 = arith.addf %243, %268 : vector<2x10xf32>
    %c0_79 = arith.constant 0 : index
    %c0_80 = arith.constant 0 : index
    %c0_81 = arith.constant 0 : index
    %270 = vector.load %arg6[%c0_79, %c0_80, %c0_81] : memref<2x2x10xf32, #tpu.memory_space<vmem>>, vector<1x2x10xf32>
    %271 = vector.shape_cast %270 : vector<1x2x10xf32> to vector<2x10xf32>
    %272 = arith.addf %271, %260 : vector<2x10xf32>
    %c0_82 = arith.constant 0 : index
    %c0_83 = arith.constant 0 : index
    %c0_84 = arith.constant 0 : index
    %273 = vector.load %arg6[%c0_82, %c0_83, %c0_84] : memref<2x2x10xf32, #tpu.memory_space<vmem>>, vector<1x2x10xf32>
    %274 = vector.shape_cast %273 : vector<1x2x10xf32> to vector<2x10xf32>
    %275 = vector.shape_cast %272 : vector<2x10xf32> to vector<1x2x10xf32>
    tpu.vector_store %arg6[%c0_82, %c0_83, %c0_84], %275 {strides = array<i32>} : memref<2x2x10xf32, #tpu.memory_space<vmem>>, vector<1x2x10xf32>,
    %c1_85 = arith.constant 1 : index
    %c0_86 = arith.constant 0 : index
    %c0_87 = arith.constant 0 : index
    %276 = vector.load %arg6[%c1_85, %c0_86, %c0_87] : memref<2x2x10xf32, #tpu.memory_space<vmem>>, vector<1x2x10xf32>
    %277 = vector.shape_cast %276 : vector<1x2x10xf32> to vector<2x10xf32>
    %278 = arith.addf %277, %269 : vector<2x10xf32>
    %c1_88 = arith.constant 1 : index
    %c0_89 = arith.constant 0 : index
    %c0_90 = arith.constant 0 : index
    %279 = vector.load %arg6[%c1_88, %c0_89, %c0_90] : memref<2x2x10xf32, #tpu.memory_space<vmem>>, vector<1x2x10xf32>
    %280 = vector.shape_cast %279 : vector<1x2x10xf32> to vector<2x10xf32>
    %281 = vector.shape_cast %278 : vector<2x10xf32> to vector<1x2x10xf32>
    tpu.vector_store %arg6[%c1_88, %c0_89, %c0_90], %281 {strides = array<i32>} : memref<2x2x10xf32, #tpu.memory_space<vmem>>, vector<1x2x10xf32>,
    %c0_i32_91 = arith.constant 0 : i32
    %282 = arith.cmpi eq, %arg1, %c0_i32_91 : i32
    %283 = arith.extui %282 : i1 to i32
    %c0_i32_92 = arith.constant 0 : i32
    %284 = arith.cmpi ne, %283, %c0_i32_92 : i32
    scf.if %284 {
      %c2_i32_93 = arith.constant 2 : i32
      %285 = arith.muli %arg0, %c2_i32_93 : i32
      %286 = tpu.iota {dimensions = array<i32: 0>} : vector<2x1xi32>
      %287 = vector.broadcast %285 : i32 to vector<2x1xi32>
      %288 = arith.addi %287, %286 : vector<2x1xi32>
      %c2_i32_94 = arith.constant 2 : i32
      %289 = vector.broadcast %c2_i32_94 : i32 to vector<2x1xi32>
      %290 = arith.cmpi slt, %288, %289 : vector<2x1xi32>
      %c0_95 = arith.constant 0 : index
      %c0_96 = arith.constant 0 : index
      %291 = vector.load %arg4[%c0_95, %c0_96] : memref<2x10xi32, #tpu.memory_space<vmem>>, vector<2x10xi32>
      %c0_i32_97 = arith.constant 0 : i32
      %292 = vector.broadcast %c0_i32_97 : i32 to vector<2x10xi32>
      %293 = arith.cmpi eq, %291, %292 : vector<2x10xi32>
      %294 = arith.extui %293 : vector<2x10xi1> to vector<2x10xi32>
      %295 = arith.sitofp %294 : vector<2x10xi32> to vector<2x10xf32>
      %cst_98 = arith.constant 1.000000e+00 : f32
      %296 = vector.broadcast %cst_98 : f32 to vector<2x10xf32>
      %297 = arith.subf %296, %295 : vector<2x10xf32>
      %cst_99 = arith.constant dense<0.000000e+00> : vector<2xf32>
      %298 = vector.multi_reduction <add>, %297, %cst_99 [1] : vector<2x10xf32> to vector<2xf32>
      %299 = vector.shape_cast %298 : vector<2xf32> to vector<2x1xf32>
      %c0_100 = arith.constant 0 : index
      %c0_101 = arith.constant 0 : index
      %c0_102 = arith.constant 0 : index
      %300 = vector.load %arg6[%c0_100, %c0_101, %c0_102] : memref<2x2x10xf32, #tpu.memory_space<vmem>>, vector<2x2x10xf32>
      %cst_103 = arith.constant 1.000000e+00 : f32
      %301 = vector.broadcast %cst_103 : f32 to vector<2x2x10xf32>
      %302 = arith.mulf %300, %301 : vector<2x2x10xf32>
      %303 = vector.shape_cast %290 : vector<2x1xi1> to vector<1x2x1xi1>
      %cst_104 = arith.constant 0.000000e+00 : f32
      %304 = vector.shape_cast %303 : vector<1x2x1xi1> to vector<1x2x1xi1>
      %305 = vector.broadcast %304 : vector<1x2x1xi1> to vector<2x2x10xi1>
      %306 = vector.broadcast %cst_104 : f32 to vector<2x2x10xf32>
      %307 = arith.select %305, %302, %306 : vector<2x2x10xi1>, vector<2x2x10xf32>
      %308 = math.exp %307 : vector<2x2x10xf32>
      %309 = vector.shape_cast %295 : vector<2x10xf32> to vector<1x2x10xf32>
      %310 = vector.broadcast %309 : vector<1x2x10xf32> to vector<2x2x10xf32>
      %311 = arith.mulf %308, %310 : vector<2x2x10xf32>
      %cst_105 = arith.constant dense<0.000000e+00> : vector<2x2xf32>
      %312 = vector.multi_reduction <add>, %311, %cst_105 [2] : vector<2x2x10xf32> to vector<2x2xf32>
      %313 = vector.shape_cast %312 : vector<2x2xf32> to vector<2x2x1xf32>
      %314 = vector.broadcast %313 : vector<2x2x1xf32> to vector<2x2x10xf32>
      %315 = arith.addf %308, %314 : vector<2x2x10xf32>
      %cst_106 = arith.constant 9.99999974E-5 : f32
      %316 = vector.broadcast %cst_106 : f32 to vector<2x2x10xf32>
      %317 = arith.addf %315, %316 : vector<2x2x10xf32>
      %318 = math.log %317 : vector<2x2x10xf32>
      %319 = arith.subf %318, %307 : vector<2x2x10xf32>
      %320 = vector.shape_cast %297 : vector<2x10xf32> to vector<1x2x10xf32>
      %321 = vector.broadcast %320 : vector<1x2x10xf32> to vector<2x2x10xf32>
      %322 = arith.mulf %319, %321 : vector<2x2x10xf32>
      %cst_107 = arith.constant dense<0.000000e+00> : vector<2x2xf32>
      %323 = vector.multi_reduction <add>, %322, %cst_107 [2] : vector<2x2x10xf32> to vector<2x2xf32>
      %324 = vector.shape_cast %323 : vector<2x2xf32> to vector<2x2x1xf32>
      %cst_108 = arith.constant 1.000000e+00 : f32
      %325 = vector.broadcast %cst_108 : f32 to vector<2x2x1xf32>
      %326 = arith.addf %325, %313 : vector<2x2x1xf32>
      %cst_109 = arith.constant 9.99999974E-5 : f32
      %327 = vector.broadcast %cst_109 : f32 to vector<2x2x1xf32>
      %328 = arith.addf %326, %327 : vector<2x2x1xf32>
      %329 = math.log %328 : vector<2x2x1xf32>
      %330 = arith.addf %324, %329 : vector<2x2x1xf32>
      %cst_110 = arith.constant dense<0.000000e+00> : vector<2x1xf32>
      %331 = vector.multi_reduction <add>, %330, %cst_110 [0] : vector<2x2x1xf32> to vector<2x1xf32>
      %cst_111 = arith.constant 9.99999974E-5 : f32
      %332 = vector.broadcast %cst_111 : f32 to vector<2x1xf32>
      %333 = arith.addf %299, %332 : vector<2x1xf32>
      %334 = tpu.reciprocal %333 : vector<2x1xf32> -> vector<2x1xf32>
      %cst_112 = arith.constant 5.000000e-01 : f32
      %335 = vector.broadcast %cst_112 : f32 to vector<2x1xf32>
      %336 = arith.mulf %335, %334 : vector<2x1xf32>
      %337 = arith.mulf %331, %336 : vector<2x1xf32>
      %cst_113 = arith.constant 0.000000e+00 : f32
      %338 = vector.broadcast %cst_113 : f32 to vector<2x1xf32>
      %339 = arith.select %290, %337, %338 : vector<2x1xi1>, vector<2x1xf32>
      %cst_114 = arith.constant dense<0.000000e+00> : vector<1xf32>
      %340 = vector.multi_reduction <add>, %339, %cst_114 [0] : vector<2x1xf32> to vector<1xf32>
      %341 = vector.shape_cast %340 : vector<1xf32> to vector<1x1xf32>
      %cst_115 = arith.constant 0.000000e+00 : f32
      %342 = vector.broadcast %cst_115 : f32 to vector<8x128xf32>
      %343 = vector.broadcast %341 : vector<1x1xf32> to vector<8x128xf32>
      %344 = arith.addf %342, %343 : vector<8x128xf32>
      %c0_116 = arith.constant 0 : index
      %c0_117 = arith.constant 0 : index
      %345 = vector.load %arg5[%c0_116, %c0_117] : memref<8x128xf32, #tpu.memory_space<vmem>>, vector<8x128xf32>
      tpu.vector_store %arg5[%c0_116, %c0_117], %344 {strides = array<i32>} : memref<8x128xf32, #tpu.memory_space<vmem>>, vector<8x128xf32>,
    } else {
    }
    return
  }
  func.func @transform_0(%arg0: i32, %arg1: i32) -> (i32, i32, i32) {
    %c0_i32 = arith.constant 0 : i32
    %c0_i32_0 = arith.constant 0 : i32
    return %c0_i32, %arg0, %arg1 : i32, i32, i32
  }
  func.func @transform_1(%arg0: i32, %arg1: i32) -> (i32, i32, i32) {
    %c0_i32 = arith.constant 0 : i32
    %c0_i32_0 = arith.constant 0 : i32
    return %c0_i32, %arg0, %arg1 : i32, i32, i32
  }
  func.func @transform_2(%arg0: i32, %arg1: i32) -> (i32, i32) {
    %c0_i32 = arith.constant 0 : i32
    %c0_i32_0 = arith.constant 0 : i32
    %c0_i32_1 = arith.constant 0 : i32
    return %c0_i32, %c0_i32_0 : i32, i32
  }
  func.func @transform_3(%arg0: i32, %arg1: i32) -> (i32, i32) {
    %c0_i32 = arith.constant 0 : i32
    %c0_i32_0 = arith.constant 0 : i32
    return %arg0, %c0_i32 : i32, i32
  }
}

</mosaic_0001>

<bundles_post_ra>
// kernel: tpu_custom_call.1
= control target key start
LH: loop header
LB: loop body
LE: loop exit
PB: predicated region body
PF: predicated region fallthrough
CT: control target
= control target key end

     0   :  { %8 = vsyncpa [#allocation4], 0  ;;  %s589_s0 = inlined_call_operand.hbm [shape: f32[2,2,32], index: 0, kind: input, shape index: {}]   ;;  %s590_s1 = inlined_call_operand.hbm [shape: f32[10,2,32], index: 1, kind: input, shape index: {}]   ;;  %s591_s2 = inlined_call_operand.hbm [shape: s32[2,10], index: 2, kind: input, shape index: {}]   ;;  %s592_s3 = inlined_call_operand.hbm [shape: f32[8,128], index: 3, kind: output, shape index: {}]  }
   0x1   :  { %9 = vsyncpa [#allocation7], 0 }
   0x2   :  { %10 = vsyncpa [#allocation5], 0  ;;  %s28_s14 = sshll.u32 %s590_s1, 4  ;;  %s486_s15 = smov [#allocation6]   ;;  %s29_s14 = int_to_ptr.hbm [resolvable:$true] %s28_s14 }
   0x3   :  { %s30_s16 = sshll.u32 %s486_s15, 4  ;;  %s15_s19 = sshll.u32 %s589_s0, 4  ;;  %s31_s16 = int_to_ptr.vmem [resolvable:$true] %s30_s16  ;;  %s16_s19 = int_to_ptr.hbm [resolvable:$true] %s15_s19 }
   0x4   :  { %s487_s20 = smov 32   ;;  %s488_s21 = smov 2  }
   0x5   :  { %36 = dma.hbm_to_vmem [thread:$0]  %s29_s14, 320, %s31_s16, [#allocation7], %s487_s20, %s487_s20, %s488_s21  }
   0x6   :  { %s489_s22 = smov [#allocation3]   ;;  %s42_s26 = sshll.u32 %s591_s2, 4  ;;  %s43_s26 = int_to_ptr.hbm [resolvable:$true] %s42_s26 }
   0x7   :  { %s17_s23 = sshll.u32 %s489_s22, 4  ;;  %s490_s1 = smov [#allocation8]   ;;  %s18_s23 = int_to_ptr.vmem [resolvable:$true] %s17_s23 }
   0x8   :  { %23 = dma.hbm_to_vmem [thread:$0]  %s16_s19, 64, %s18_s23, [#allocation4], %s487_s20, %s487_s20, %s488_s21  }
   0x9   :  { %s44_s27 = sshll.u32 %s490_s1, 4  ;;  %s45_s27 = int_to_ptr.vmem [resolvable:$true] %s44_s27 }
   0xa   :  { %47 = dma.hbm_to_vmem [thread:$0]  %s43_s26, 32, %s45_s27, [#allocation7]  }
   0xb   :  { %480 = dma.done.wait [#allocation4], 64  }
   0xc   :  { %481 = vsyncadd [#allocation4], 4294967232 }
   0xd   :  { %482 = dma.done.wait [#allocation7], 352  }
   0xe   :  { %483 = vsyncadd [#allocation7], 4294966944  ;;  %vm74_vm0 = vcmask 254976   ;;  %v522_v0 = vld [vmem:[#allocation3] sm:$0x3]  ;;  %vm64_vm1 = vcmask 74752   ;;  %v70_v59 = vlaneseq }
   0xf   :  { %v90_v1 = vld [vmem:[#allocation6 + $0x2] sm:$0x3]  ;;  %v72_v2 = vld [vmem:[#allocation6] sm:$0x3]  ;;  %v107_v5 = vld [vmem:[#allocation6 + $0x4] sm:$0x3] }
  0x10   :  { %v91_v3 = vmul.f32 %v90_v1, %v522_v0  ;;  %v73_v4 = vmul.f32 %v72_v2, %v522_v0  ;;  %v108_v6 = vmul.f32 %v107_v5, %v522_v0  ;;  %v69_v7 = vld [vmem:[#allocation3 + $0x2] sm:$0x3]  ;;  %v124_v17 = vld [vmem:[#allocation6 + $0x6] sm:$0x3]  ;;  %v141_v18 = vld [vmem:[#allocation6 + $0x8] sm:$0x3] }
  0x11   :  { %v95_v11 = vmul.f32 %v90_v1, %v69_v7  ;;  %v78_v12 = vmul.f32 %v72_v2, %v69_v7  ;;  %v112_v13 = vmul.f32 %v107_v5, %v69_v7  ;;  %v129_v19 = vmul.f32 %v124_v17, %v69_v7  ;;  %v158_v25 = vld [vmem:[#allocation6 + $0xa] sm:$0x3]  ;;  %v175_v32 = vld [vmem:[#allocation6 + $0xc] sm:$0x3]  ;;  %v192_v33 = vld [vmem:[#allocation6 + $0xe] sm:$0x3] }
  0x12   :  { %v92_v8 = vsel %vm74_vm0, %v91_v3, 0.0  ;;  %v75_v9 = vsel %vm74_vm0, %v73_v4, 0.0  ;;  %v109_v10 = vsel %vm74_vm0, %v108_v6, 0.0  ;;  %v125_v20 = vmul.f32 %v124_v17, %v522_v0  ;;  %v209_v40 = vld [vmem:[#allocation6 + $0x10] sm:$0x3]  ;;  %s492_s0 = smov [#allocation9]  }
  0x13   :  { %93 = vadd.xlane.f32.xlu1 %v92_v8  ;;  %76 = vadd.xlane.f32.xlu0 %v75_v9  ;;  %v96_v14 = vsel %vm74_vm0, %v95_v11, 0.0  ;;  %v79_v15 = vsel %vm74_vm0, %v78_v12, 0.0  ;;  %v113_v16 = vsel %vm74_vm0, %v112_v13, 0.0  ;;  %v142_v21 = vmul.f32 %v141_v18, %v522_v0  ;;  %v226_v47 = vld [vmem:[#allocation6 + $0x12] sm:$0x3]  ;;  %s349_s2 = sshll.u32 %s492_s0, 4  ;;  %s350_s2 = int_to_ptr.vmem [resolvable:$true] %s349_s2 }
  0x14   :  { %110 = vadd.xlane.f32.xlu2 %v109_v10  ;;  %v130_v22 = vsel %vm74_vm0, %v129_v19, 0.0  ;;  %v126_v23 = vsel %vm74_vm0, %v125_v20, 0.0  ;;  %v159_v26 = vmul.f32 %v158_v25, %v522_v0  ;;  %v146_v27 = vmul.f32 %v141_v18, %v69_v7  ;;  %s351_s30 = sshll.u32 %s592_s3, 4  ;;  %s352_s30 = int_to_ptr.hbm [resolvable:$true] %s351_s30 }
  0x15   :  { %v143_v24 = vsel %vm74_vm0, %v142_v21, 0.0  ;;  %v163_v28 = vmul.f32 %v158_v25, %v69_v7  ;;  %v180_v34 = vmul.f32 %v175_v32, %v69_v7  ;;  %v176_v35 = vmul.f32 %v175_v32, %v522_v0  ;;  %v259_v25 = vld [vmem:[#allocation8] sm:$0x3] }
  0x16   :  { %v160_v29 = vsel %vm74_vm0, %v159_v26, 0.0  ;;  %v147_v30 = vsel %vm74_vm0, %v146_v27, 0.0  ;;  %v193_v36 = vmul.f32 %v192_v33, %v522_v0  ;;  %v210_v41 = vmul.f32 %v209_v40, %v522_v0 }
  0x17   :  { %v164_v31 = vsel %vm74_vm0, %v163_v28, 0.0  ;;  %v181_v37 = vsel %vm74_vm0, %v180_v34, 0.0  ;;  %v177_v38 = vsel %vm74_vm0, %v176_v35, 0.0  ;;  %v197_v42 = vmul.f32 %v192_v33, %v69_v7 }
  0x18   :  { %v194_v39 = vsel %vm74_vm0, %v193_v36, 0.0  ;;  %v214_v43 = vmul.f32 %v209_v40, %v69_v7  ;;  %v211_v44 = vsel %vm74_vm0, %v210_v41, 0.0  ;;  %v231_v48 = vmul.f32 %v226_v47, %v69_v7 }
  0x19   :  { %v198_v45 = vsel %vm74_vm0, %v197_v42, 0.0  ;;  %v227_v49 = vmul.f32 %v226_v47, %v522_v0  ;;  %v491_v58 = vmov 0.0   ;;  %v557_v63 = vand.u32 127, %v70_v59 }
  0x1a   :  { %v215_v46 = vsel %vm74_vm0, %v214_v43, 0.0  ;;  %v232_v50 = vsel %vm74_vm0, %v231_v48, 0.0  ;;  %66 = vst.msk [vmem:[#allocation2 + $0x2] sm:$0x3] %vm64_vm1, %v491_v58  ;;  %vm260_vm10 = vcmp.eq.s32.totalorder %v259_v25, 0 }
  0x1b   :  { %97 = vadd.xlane.f32.xlu1 %v96_v14  ;;  %80 = vadd.xlane.f32.xlu0 %v79_v15  ;;  %v228_v51 = vsel %vm74_vm0, %v227_v49, 0.0  ;;  %65 = vst.msk [vmem:[#allocation2] sm:$0x3] %vm64_vm1, %v491_v58  ;;  %vm99_vm2 = vcmp.eq.s32.totalorder %v557_v63, 1  ;;  %vm82_vm3 = vcmp.eq.s32.totalorder %v557_v63, 0  ;;  %vm116_vm4 = vcmp.eq.s32.totalorder %v557_v63, 2 }
  0x1c   :  { %114 = vadd.xlane.f32.xlu2 %v113_v16  ;;  %vm133_vm5 = vcmp.eq.s32.totalorder %v557_v63, 3  ;;  %vm150_vm6 = vcmp.eq.s32.totalorder %v557_v63, 4  ;;  %vm167_vm7 = vcmp.eq.s32.totalorder %v557_v63, 5  ;;  %vm184_vm8 = vcmp.eq.s32.totalorder %v557_v63, 6 }
  0x1d   :  { %vm201_vm9 = vcmp.eq.s32.totalorder %v557_v63, 7  ;;  %vm218_vm11 = vcmp.eq.s32.totalorder %v557_v63, 8  ;;  %vm235_vm12 = vcmp.eq.s32.totalorder %v557_v63, 9 }
  0x23   :  { %131 = vadd.xlane.f32.xlu1 %v130_v22  ;;  %127 = vadd.xlane.f32.xlu0 %v126_v23 }
  0x24   :  { %144 = vadd.xlane.f32.xlu2 %v143_v24 }
  0x2b   :  { %161 = vadd.xlane.f32.xlu1 %v160_v29  ;;  %148 = vadd.xlane.f32.xlu0 %v147_v30 }
  0x2c   :  { %165 = vadd.xlane.f32.xlu2 %v164_v31 }
  0x33   :  { %182 = vadd.xlane.f32.xlu1 %v181_v37  ;;  %178 = vadd.xlane.f32.xlu0 %v177_v38  ;;  %v362_v38 = vsel %vm260_vm10, 1.0, %v491_v58 }
  0x34   :  { %195 = vadd.xlane.f32.xlu2 %v194_v39  ;;  %v263_v40 = vsub.f32 1.0, %v362_v38 }
  0x3b   :  { %212 = vadd.xlane.f32.xlu1 %v211_v44  ;;  %199 = vadd.xlane.f32.xlu0 %v198_v45  ;;  %v264_v44 = vsel %vm64_vm1, %v263_v40, 0.0 }
  0x3c   :  { %216 = vadd.xlane.f32.xlu2 %v215_v46 }
  0x43   :  { %233 = vadd.xlane.f32.xlu1 %v232_v50  ;;  %229 = vadd.xlane.f32.xlu0 %v228_v51  ;;  %v247_v50 = vld [vmem:[#allocation2 + $0x2] sm:$0x3] }
  0x4b   :  { %265 = vadd.xlane.f32.xlu1 %v264_v44 }
  0x86   :  { %v94_v52 = vpop.xlane.xlu1 %93  ;;  %v77_v53 = vpop.xlane.xlu0 %76 }
  0x87   :  { %v111_v54 = vpop.xlane.xlu2 %110  ;;  %v102_v2 = vsel %vm99_vm2, %v94_v52, 0.0  ;;  %v85_v3 = vsel %vm82_vm3, %v77_v53, 0.0  ;;  %v242_v52 = vld [vmem:[#allocation2] sm:$0x3] }
  0x88   :  { %v103_v7 = vadd.f32 %v102_v2, %v85_v3  ;;  %v119_v9 = vsel %vm116_vm4, %v111_v54, 0.0 }
  0x8a   :  { %v120_v13 = vadd.f32 %v119_v9, %v103_v7 }
  0x8e   :  { %v98_v55 = vpop.xlane.xlu1 %97  ;;  %v81_v56 = vpop.xlane.xlu0 %80 }
  0x8f   :  { %v115_v57 = vpop.xlane.xlu2 %114  ;;  %v104_v4 = vsel %vm99_vm2, %v98_v55, 0.0  ;;  %v87_v5 = vsel %vm82_vm3, %v81_v56, 0.0 }
  0x90   :  { %v105_v8 = vadd.f32 %v104_v4, %v87_v5  ;;  %v121_v10 = vsel %vm116_vm4, %v115_v57, 0.0  ;;  %v573_v57 = vshrl.u32 %v70_v59, 7 }
  0x92   :  { %v122_v14 = vadd.f32 %v121_v10, %v105_v8  ;;  %vm258_vm13 = vcmp.lt.s32.totalorder %v573_v57, 2 }
  0x96   :  { %v132_v60 = vpop.xlane.xlu1 %131  ;;  %v128_v61 = vpop.xlane.xlu0 %127 }
  0x97   :  { %v145_v62 = vpop.xlane.xlu2 %144  ;;  %v138_v11 = vsel %vm133_vm5, %v132_v60, 0.0  ;;  %v136_v12 = vsel %vm133_vm5, %v128_v61, 0.0 }
  0x98   :  { %v139_v19 = vadd.f32 %v138_v11, %v122_v14  ;;  %v137_v20 = vadd.f32 %v136_v12, %v120_v13  ;;  %v153_v21 = vsel %vm150_vm6, %v145_v62, 0.0 }
  0x9a   :  { %v154_v26 = vadd.f32 %v153_v21, %v137_v20 }
  0x9e   :  { %v162_v0 = vpop.xlane.xlu1 %161  ;;  %v149_v1 = vpop.xlane.xlu0 %148 }
  0x9f   :  { %v166_v6 = vpop.xlane.xlu2 %165  ;;  %v155_v17 = vsel %vm150_vm6, %v149_v1, 0.0  ;;  %v170_v23 = vsel %vm167_vm7, %v162_v0, 0.0 }
  0xa0   :  { %v156_v22 = vadd.f32 %v155_v17, %v139_v19  ;;  %v172_v24 = vsel %vm167_vm7, %v166_v6, 0.0  ;;  %v171_v29 = vadd.f32 %v170_v23, %v154_v26 }
  0xa2   :  { %v173_v30 = vadd.f32 %v172_v24, %v156_v22 }
  0xa6   :  { %v183_v15 = vpop.xlane.xlu1 %182  ;;  %v179_v16 = vpop.xlane.xlu0 %178 }
  0xa7   :  { %v196_v18 = vpop.xlane.xlu2 %195  ;;  %v189_v27 = vsel %vm184_vm8, %v183_v15, 0.0  ;;  %v187_v28 = vsel %vm184_vm8, %v179_v16, 0.0 }
  0xa8   :  { %v190_v34 = vadd.f32 %v189_v27, %v173_v30  ;;  %v188_v35 = vadd.f32 %v187_v28, %v171_v29  ;;  %v204_v37 = vsel %vm201_vm9, %v196_v18, 0.0 }
  0xaa   :  { %v205_v43 = vadd.f32 %v204_v37, %v188_v35 }
  0xae   :  { %v213_v31 = vpop.xlane.xlu1 %212  ;;  %v200_v32 = vpop.xlane.xlu0 %199 }
  0xaf   :  { %v206_v33 = vsel %vm201_vm9, %v200_v32, 0.0  ;;  %v217_v36 = vpop.xlane.xlu2 %216  ;;  %v221_v41 = vsel %vm218_vm11, %v213_v31, 0.0 }
  0xb0   :  { %v207_v39 = vadd.f32 %v206_v33, %v190_v34  ;;  %v223_v42 = vsel %vm218_vm11, %v217_v36, 0.0  ;;  %v222_v45 = vadd.f32 %v221_v41, %v205_v43 }
  0xb2   :  { %v224_v46 = vadd.f32 %v223_v42, %v207_v39 }
  0xb6   :  { %v234_v47 = vpop.xlane.xlu1 %233  ;;  %v230_v48 = vpop.xlane.xlu0 %229 }
  0xb7   :  { %v240_v49 = vsel %vm235_vm12, %v234_v47, 0.0  ;;  %v238_v51 = vsel %vm235_vm12, %v230_v48, 0.0 }
  0xb8   :  { %v241_v53 = vadd.f32 %v240_v49, %v224_v46  ;;  %v239_v54 = vadd.f32 %v238_v51, %v222_v45 }
  0xba   :  { %v248_v55 = vadd.f32 %v247_v50, %v241_v53  ;;  %v243_v56 = vadd.f32 %v242_v52, %v239_v54 }
  0xbc   :  { %249 = vst.msk [vmem:[#allocation2 + $0x2] sm:$0x3] %vm64_vm1, %v248_v55 }
  0xbd   :  { %245 = vst.msk [vmem:[#allocation2] sm:$0x3] %vm64_vm1, %v243_v56 }
  0xbe   :  { %v266_v22 = vpop.xlane.xlu1 %265 }
  0xbf   :  { %v317_v23 = vadd.f32 0.0001, %v266_v22 }
  0xc1   :  { %vm323_vm14 = vweird.f32 %v317_v23  ;;  %v329_v32 = vand.u32 2147483648, %v317_v23  ;;  %v327_v35 = vand.u32 2147483647, %v317_v23 }
  0xc3   :  { %v268_v58 = vld [vmem:[#allocation2 + $0x2] sm:$0x3]  ;;  %vm328_vm2 = vcmp.eq.f32.partialorder %v327_v35, 8.507059e+37 }
  0xc4   :  { %v272_v60 = vsel %vm258_vm13, %v268_v58, 0.0  ;;  %v267_v61 = vld [vmem:[#allocation2] sm:$0x3] }
  0xc5   :  { %v275_v62 = vmul.f32 1.442695, %v272_v60  ;;  %v271_v63 = vsel %vm258_vm13, %v267_v61, 0.0 }
  0xc6   :  { %v273_v0 = vmul.f32 1.442695, %v271_v63 }
  0xc7   :  { %370 = vpow2.f32 %v275_v62 }
  0xc8   :  { %372 = vpow2.f32 %v273_v0 }
  0xcd   :  { %v371_v1 = vpop.eup %370 }
  0xce   :  { %v373_v2 = vpop.eup %372  ;;  %v278_v3 = vmul.f32 %v371_v1, %v362_v38 }
  0xcf   :  { %v277_v4 = vmul.f32 %v373_v2, %v362_v38  ;;  %v330_v38 = vor.u32 1.1754944e-38, %v329_v32 }
  0xd0   :  { %v282_v59 = vsel %vm64_vm1, %v278_v3, 0.0 }
  0xd1   :  { %283 = vadd.xlane.f32.xlu0 %v282_v59  ;;  %v279_v5 = vsel %vm64_vm1, %v277_v4, 0.0 }
  0xd2   :  { %280 = vadd.xlane.f32.xlu2 %v279_v5 }
 0x144   :  { %v284_v6 = vpop.xlane.xlu0 %283 }
 0x145   :  { %v286_v7 = vadd.f32 %v371_v1, %v284_v6  ;;  %v281_v8 = vpop.xlane.xlu2 %280  ;;  %v304_v25 = vadd.f32 1.0, %v284_v6 }
 0x146   :  { %v285_v9 = vadd.f32 %v373_v2, %v281_v8  ;;  %v303_v26 = vadd.f32 1.0, %v281_v8 }
 0x147   :  { %v288_v10 = vadd.f32 0.0001, %v286_v7  ;;  %v306_v28 = vadd.f32 0.0001, %v304_v25 }
 0x148   :  { %v287_v11 = vadd.f32 0.0001, %v285_v9  ;;  %v305_v29 = vadd.f32 0.0001, %v303_v26 }
 0x149   :  { %374 = vlog2.f32 %v288_v10 }
 0x14a   :  { %376 = vlog2.f32 %v287_v11 }
 0x14b   :  { %378 = vrcp.f32 %v317_v23 }
 0x14c   :  { %380 = vlog2.f32 %v306_v28 }
 0x14d   :  { %382 = vlog2.f32 %v305_v29 }
 0x14f   :  { %v375_v12 = vpop.eup %374 }
 0x150   :  { %v292_v13 = vmul.f32 0.6931472, %v375_v12  ;;  %v377_v14 = vpop.eup %376 }
 0x151   :  { %v290_v15 = vmul.f32 0.6931472, %v377_v14  ;;  %v379_v24 = vpop.eup %378 }
 0x152   :  { %v294_v16 = vsub.f32 %v292_v13, %v272_v60  ;;  %v319_v27 = vmul.f32 %v379_v24, %v317_v23  ;;  %vm324_vm15 = vweird.f32 %v379_v24  ;;  %v381_v33 = vpop.eup %380 }
 0x153   :  { %v293_v18 = vsub.f32 %v290_v15, %v271_v63  ;;  %vm325_vm0 = vmor %vm323_vm14, %vm324_vm15  ;;  %v383_v36 = vpop.eup %382  ;;  %v310_v37 = vmul.f32 0.6931472, %v381_v33 }
 0x154   :  { %v296_v17 = vmul.f32 %v294_v16, %v263_v40  ;;  %v320_v30 = vsub.f32 1.0, %v319_v27  ;;  %v308_v42 = vmul.f32 0.6931472, %v383_v36 }
 0x155   :  { %v295_v20 = vmul.f32 %v293_v18, %v263_v40 }
 0x156   :  { %v300_v19 = vsel %vm64_vm1, %v296_v17, 0.0  ;;  %v321_v31 = vmul.f32 %v379_v24, %v320_v30 }
 0x157   :  { %301 = vadd.xlane.f32.xlu0 %v300_v19  ;;  %v297_v21 = vsel %vm64_vm1, %v295_v20, 0.0  ;;  %vm313_vm1 = vcmask 1041408  }
 0x158   :  { %298 = vadd.xlane.f32.xlu2 %v297_v21  ;;  %v322_v34 = vadd.f32 %v379_v24, %v321_v31 }
 0x15a   :  { %v326_v40 = vsel %vm325_vm0, %v379_v24, %v322_v34 }
 0x15b   :  { %v331_v45 = vsel %vm328_vm2, %v330_v38, %v326_v40 }
 0x15c   :  { %v332_v48 = vmul.f32 0.5, %v331_v45 }
 0x1ca   :  { %v302_v39 = vpop.xlane.xlu0 %301 }
 0x1cb   :  { %v312_v41 = vadd.f32 %v310_v37, %v302_v39  ;;  %v299_v43 = vpop.xlane.xlu2 %298 }
 0x1cc   :  { %v311_v46 = vadd.f32 %v308_v42, %v299_v43 }
 0x1cd   :  { %v315_v44 = vsel %vm313_vm1, %v312_v41, 0.0 }
 0x1ce   :  { %v314_v47 = vsel %vm313_vm1, %v311_v46, 0.0 }
 0x1cf   :  { %v316_v49 = vadd.f32 %v315_v44, %v314_v47 }
 0x1d1   :  { %v333_v50 = vmul.f32 %v332_v48, %v316_v49 }
 0x1d3   :  { %v334_v51 = vsel %vm258_vm13, %v333_v50, 0.0 }
 0x1d4   :  { %v335_v52 = vsel %vm313_vm1, %v334_v51, 0.0 }
 0x1d5   :  { %v336_v53 = vrot.slane %v335_v52, 4 }
 0x1d7   :  { %v337_v54 = vadd.f32 %v336_v53, %v335_v52 }
 0x1d9   :  { %v338_v55 = vrot.slane %v337_v54, 2 }
 0x1db   :  { %v339_v56 = vadd.f32 %v338_v55, %v337_v54 }
 0x1dd   :  { %v340_v58 = vrot.slane %v339_v56, 1 }
 0x1df   :  { %v341_v60 = vadd.f32 %v340_v58, %v339_v56 }
 0x1e1   :  { %343 = vst [vmem:[#allocation9] sm:$0xff] %v341_v60 }
 0x1e2   :  { %354 = dma.vmem_to_hbm [thread:$0]  %s350_s2, 128, %s352_s30, [#allocation5]  }
 0x1e3   :  { %484 = dma.done.wait [#allocation5], 128  }
 0x1e4   :  { %485 = vsyncadd [#allocation5], 4294967168 }
 0x1e5   :  { %359 = vsyncpa [#allocation4], 1 }
 0x1e6   :  { %360 = vsyncpa [#allocation7], 1 }
 0x1e7   :  { %361 = vsyncpa [#allocation5], 1 }

</bundles_post_ra>
